<compile_context>
chip_gen: v7x
topology: tpu7x:2x2x1
jax: 0.10.0
libtpu: 0.0.40
codegen_flags: <defaults>
</compile_context>

<pallas_src>
import functools
import math

import jax
import jax.numpy as jnp
from jax.experimental import pallas as pl
from jax.experimental.pallas import tpu as pltpu


def _round_up(x, m):
    return ((x + m - 1) // m) * m


def _flash_self_attention_kernel(mask_q_ref, mask_k_ref, q_ref, k_ref, v_ref,
                                 o_ref, m_sc, l_sc, acc_sc, *, approx):
    """One (batch-tile, q-tile, k-tile) step of online-softmax attention.

    Shapes (batch tile bt, query tile bq, key tile bk, padded dims Dk, Dv):
      mask_q_ref: (bt, bq, 1) int32   nonzero == padded query position
      mask_k_ref: (bt, 1, bk) int32   nonzero == padded key position
      q_ref:      (bt, bq, Dk)
      k_ref:      (bt, bk, Dk)
      v_ref:      (bt, bk, Dv)
      o_ref:      (bt, bq, Dv)
      scratch:    m_sc/l_sc (bt, bq, 1) f32, acc_sc (bt, bq, Dv) f32
    """
    qi = pl.program_id(1)
    ki = pl.program_id(2)
    bq = q_ref.shape[1]
    bk = k_ref.shape[1]

    @pl.when(ki == 0)
    def _init():
        m_sc[...] = jnp.full(m_sc.shape, -jnp.inf, dtype=jnp.float32)
        l_sc[...] = jnp.zeros(l_sc.shape, dtype=jnp.float32)
        acc_sc[...] = jnp.zeros(acc_sc.shape, dtype=jnp.float32)

    # scores (bt, bq, bk): contract last dims -> no explicit K transpose.
    s = jax.lax.dot_general(
        q_ref[...], k_ref[...],
        dimension_numbers=(((2,), (2,)), ((0,), (0,))),
        preferred_element_type=jnp.float32)

    # Padded keys and the global diagonal are excluded from the softmax.
    key_pad = mask_k_ref[...] != 0                                   # (bt,1,bk)
    r_minus_c = (jax.lax.broadcasted_iota(jnp.int32, (bq, bk), 0) -
                 jax.lax.broadcasted_iota(jnp.int32, (bq, bk), 1))
    diag = (r_minus_c == (ki * bk - qi * bq))[None]                  # (1,bq,bk)
    s = jnp.where(key_pad | diag, -jnp.inf, s)

    # Online softmax update (NaN-free even for fully masked rows).
    m_prev = m_sc[...]
    m_new = jnp.maximum(m_prev, jnp.max(s, axis=-1, keepdims=True))
    m_safe = jnp.where(m_new == -jnp.inf, 0.0, m_new)
    alpha = jnp.exp(m_prev - m_safe)                                 # (bt,bq,1)
    p = jnp.exp(s - m_safe)                                          # (bt,bq,bk)
    l_sc[...] = alpha * l_sc[...] + jnp.sum(p, axis=-1, keepdims=True)
    acc_sc[...] = alpha * acc_sc[...] + jax.lax.dot_general(
        p.astype(v_ref.dtype), v_ref[...],
        dimension_numbers=(((2,), (1,)), ((0,), (0,))),
        preferred_element_type=jnp.float32)
    m_sc[...] = m_new

    @pl.when(ki == pl.num_programs(2) - 1)
    def _finalize():
        l = l_sc[...]
        inv = jnp.where(l == 0.0, 0.0, pl.reciprocal(l, approx=approx))
        # Padded query rows and fully-masked rows produce zeros (torch: NaN->0).
        zero_row = (mask_q_ref[...] != 0) | (l == 0.0)               # (bt,bq,1)
        out = jnp.where(zero_row, 0.0, acc_sc[...] * inv)
        o_ref[...] = out.astype(o_ref.dtype)


def self_attention(queries, keys, values, mask, *,
                   block_q=128, block_k=128, max_batch_block=8,
                   compute_dtype=None, approx_reciprocal=False):
    """Pallas equivalent of SelfAttention.forward.

    queries/keys: [B, L, Dk], values: [B, L, Dv], mask: [B, L] (nonzero==pad).
    compute_dtype=jnp.bfloat16 + approx_reciprocal=True enables the fast MXU
    path (v6e/v7x); the default keeps full f32 reference semantics.
    """
    B, L, Dk = queries.shape
    Dv = values.shape[-1]
    out_dtype = values.dtype

    # ---- tile sizes ------------------------------------------------------
    L8 = _round_up(max(L, 1), 8)
    if L8 <= block_k:                      # whole sequence fits one kv tile
        bq = bk = L8
    else:
        assert block_q % 8 == 0, "block_q must be a multiple of 8"
        assert block_k % 128 == 0, "block_k must be a multiple of 128"
        bq, bk = block_q, block_k
    L_pad = _round_up(L, math.lcm(bq, bk))
    Dk_p = _round_up(Dk, 128)              # lane-dense MXU / store layout
    Dv_p = _round_up(Dv, 128)

    bt = 1                                 # largest divisor of B <= max_batch_block
    for d in range(1, min(B, max_batch_block) + 1):
        if B % d == 0:
            bt = d

    # ---- wrapper-side layout plumbing (padding only, no compute) ---------
    def _pad3(x, lp, dp):
        return jnp.pad(x, ((0, 0), (0, lp - x.shape[1]), (0, dp - x.shape[2])))

    q = _pad3(queries, L_pad, Dk_p)
    k = _pad3(keys, L_pad, Dk_p)
    v = _pad3(values, L_pad, Dv_p)
    if compute_dtype is not None:
        q = q.astype(compute_dtype)
        k = k.astype(compute_dtype)
        v = v.astype(compute_dtype)

    m = (mask != 0).astype(jnp.int32)
    m = jnp.pad(m, ((0, 0), (0, L_pad - L)), constant_values=1)  # pads are "padded"
    mask_q = m.reshape(B, L_pad, 1)
    mask_k = m.reshape(B, 1, L_pad)

    grid = (B // bt, L_pad // bq, L_pad // bk)
    kernel = functools.partial(_flash_self_attention_kernel,
                               approx=approx_reciprocal)

    out_p = pl.pallas_call(
        kernel,
        out_shape=jax.ShapeDtypeStruct((B, L_pad, Dv_p), out_dtype),
        grid_spec=pltpu.PrefetchScalarGridSpec(
            num_scalar_prefetch=0,
            grid=grid,
            in_specs=[
                pl.BlockSpec((bt, bq, 1), lambda b, qi, ki: (b, qi, 0)),    # mask_q
                pl.BlockSpec((bt, 1, bk), lambda b, qi, ki: (b, 0, ki)),    # mask_k
                pl.BlockSpec((bt, bq, Dk_p), lambda b, qi, ki: (b, qi, 0)), # Q
                pl.BlockSpec((bt, bk, Dk_p), lambda b, qi, ki: (b, ki, 0)), # K
                pl.BlockSpec((bt, bk, Dv_p), lambda b, qi, ki: (b, ki, 0)), # V
            ],
            out_specs=pl.BlockSpec((bt, bq, Dv_p), lambda b, qi, ki: (b, qi, 0)),
            scratch_shapes=[
                pltpu.VMEM((bt, bq, 1), jnp.float32),     # running max m
                pltpu.VMEM((bt, bq, 1), jnp.float32),     # running sum l
                pltpu.VMEM((bt, bq, Dv_p), jnp.float32),  # output accumulator
            ]),
        compiler_params=pltpu.CompilerParams(
            dimension_semantics=("parallel", "parallel", "arbitrary"),
            vmem_limit_bytes=32 * 1024 * 1024),
    )(mask_q, mask_k, q, k, v)

    return out_p[:, :L, :Dv]


def self_attention_ref(queries, keys, values, mask):
    """Pure-JAX reference mirroring the PyTorch forward pass exactly."""
    hi = jax.lax.Precision.HIGHEST
    m = (mask != 0)[..., None]
    q = jnp.where(m, 0.0, queries)
    k = jnp.where(m, 0.0, keys)
    v = jnp.where(m, 0.0, values)
    s = jnp.einsum("bld,bmd->blm", q, k, precision=hi)
    s = jnp.where(s == 0.0, -jnp.inf, s)
    L = s.shape[1]
    eye = jnp.eye(L, dtype=bool)[None]
    s = jnp.where(eye, -jnp.inf, s)
    s_max = jnp.max(s, axis=-1, keepdims=True)
    e = jnp.exp(s - s_max)
    w = e / jnp.sum(e, axis=-1, keepdims=True)
    w = jnp.where(jnp.isnan(w), 0.0, w)
    return jnp.einsum("blm,bmd->bld", w, v, precision=hi)


if __name__ == "__main__":
    root = jax.random.PRNGKey(0)

    def make_inputs(key, B, L, Dk, Dv, valid_lens):
        kq, kk, kv = jax.random.split(key, 3)
        queries = jax.random.normal(kq, (B, L, Dk), dtype=jnp.float32)
        keys_ = jax.random.normal(kk, (B, L, Dk), dtype=jnp.float32)
        values = jax.random.normal(kv, (B, L, Dv), dtype=jnp.float32)
        mask = jnp.zeros((B, L), dtype=jnp.int32)      # nonzero == padded
        for b, n in enumerate(valid_lens):
            mask = mask.at[b, n:].set(1)
        return queries, keys_, values, mask

    k1, k2 = jax.random.split(root)

    # Case 1: module-scale shapes (single tile), exact f32 path.
    q, k, v, m = make_inputs(k1, B=2, L=8, Dk=32, Dv=32, valid_lens=(6, 5))
    out = jax.block_until_ready(self_attention(q, k, v, m))
    ref = self_attention_ref(q, k, v, m)
    assert out.shape == ref.shape
    assert jnp.allclose(out, ref, atol=1e-4, rtol=1e-4), "f32 single-tile mismatch"

    # Case 2: multi-tile flash path (2x2 q/k tiles, non-128 feature dims padded).
    q, k, v, m = make_inputs(k2, B=2, L=256, Dk=32, Dv=48, valid_lens=(250, 100))
    out = jax.block_until_ready(self_attention(q, k, v, m))
    ref = self_attention_ref(q, k, v, m)
    assert jnp.allclose(out, ref, atol=1e-4, rtol=1e-4), "f32 multi-tile mismatch"

    # Case 3: bf16 MXU + approx-reciprocal fast path (v6e/v7x) — deliberate
    # precision deviation, checked against a bf16-cast-input reference.
    out_fast = jax.block_until_ready(
        self_attention(q, k, v, m, compute_dtype=jnp.bfloat16,
                       approx_reciprocal=True))
    ref_bf16 = self_attention_ref(q.astype(jnp.bfloat16).astype(jnp.float32),
                                  k.astype(jnp.bfloat16).astype(jnp.float32),
                                  v.astype(jnp.bfloat16).astype(jnp.float32), m)
    assert jnp.allclose(out_fast, ref_bf16, atol=5e-2, rtol=5e-2), \
        "bf16 fast-path mismatch"

    print("KERNEL_OK")
</pallas_src>

<mosaic_0001>
module attributes {stable_mosaic.version = 11 : i64} {
  func.func @_flash_self_attention_kernel(%arg0: i32, %arg1: i32, %arg2: i32, %arg3: memref<2x8x1xi32, #tpu.memory_space<vmem>>, %arg4: memref<2x1x8xi32, #tpu.memory_space<vmem>>, %arg5: memref<2x8x128xf32, #tpu.memory_space<vmem>>, %arg6: memref<2x8x128xf32, #tpu.memory_space<vmem>>, %arg7: memref<2x8x128xf32, #tpu.memory_space<vmem>>, %arg8: memref<2x8x128xf32, #tpu.memory_space<vmem>>, %arg9: memref<2x8x1xf32, #tpu.memory_space<vmem>>, %arg10: memref<2x8x1xf32, #tpu.memory_space<vmem>>, %arg11: memref<2x8x128xf32, #tpu.memory_space<vmem>>) attributes {dimension_semantics = [#tpu.dimension_semantics<parallel>, #tpu.dimension_semantics<parallel>, #tpu.dimension_semantics<arbitrary>], iteration_bounds = array<i64: 1, 1, 1>, scalar_prefetch = 0 : i64, scratch_operands = 3 : i64, tpu.core_type = #tpu.core_type<tc>, window_params = [{transform_indices = @transform_0, window_bounds = array<i64: 2, 8, 1>}, {transform_indices = @transform_1, window_bounds = array<i64: 2, 1, 8>}, {transform_indices = @transform_2, window_bounds = array<i64: 2, 8, 128>}, {transform_indices = @transform_3, window_bounds = array<i64: 2, 8, 128>}, {transform_indices = @transform_4, window_bounds = array<i64: 2, 8, 128>}, {transform_indices = @transform_5, window_bounds = array<i64: 2, 8, 128>}]} {
    %c0_i32 = arith.constant 0 : i32
    %0 = arith.cmpi eq, %arg2, %c0_i32 : i32
    %1 = arith.extui %0 : i1 to i32
    %c0_i32_0 = arith.constant 0 : i32
    %2 = arith.cmpi ne, %1, %c0_i32_0 : i32
    scf.if %2 {
      %cst_40 = arith.constant 0xFF800000 : f32
      %53 = vector.broadcast %cst_40 : f32 to vector<2x8x1xf32>
      %c0_41 = arith.constant 0 : index
      %c0_42 = arith.constant 0 : index
      %c0_43 = arith.constant 0 : index
      %54 = vector.load %arg9[%c0_41, %c0_42, %c0_43] : memref<2x8x1xf32, #tpu.memory_space<vmem>>, vector<2x8x1xf32>
      tpu.vector_store %arg9[%c0_41, %c0_42, %c0_43], %53 {strides = array<i32>} : memref<2x8x1xf32, #tpu.memory_space<vmem>>, vector<2x8x1xf32>,
      %cst_44 = arith.constant 0.000000e+00 : f32
      %55 = vector.broadcast %cst_44 : f32 to vector<2x8x1xf32>
      %c0_45 = arith.constant 0 : index
      %c0_46 = arith.constant 0 : index
      %c0_47 = arith.constant 0 : index
      %56 = vector.load %arg10[%c0_45, %c0_46, %c0_47] : memref<2x8x1xf32, #tpu.memory_space<vmem>>, vector<2x8x1xf32>
      tpu.vector_store %arg10[%c0_45, %c0_46, %c0_47], %55 {strides = array<i32>} : memref<2x8x1xf32, #tpu.memory_space<vmem>>, vector<2x8x1xf32>,
      %cst_48 = arith.constant 0.000000e+00 : f32
      %57 = vector.broadcast %cst_48 : f32 to vector<2x8x128xf32>
      %c0_49 = arith.constant 0 : index
      %c0_50 = arith.constant 0 : index
      %c0_51 = arith.constant 0 : index
      %58 = vector.load %arg11[%c0_49, %c0_50, %c0_51] : memref<2x8x128xf32, #tpu.memory_space<vmem>>, vector<2x8x128xf32>
      tpu.vector_store %arg11[%c0_49, %c0_50, %c0_51], %57 {strides = array<i32>} : memref<2x8x128xf32, #tpu.memory_space<vmem>>, vector<2x8x128xf32>,
    } else {
    }
    %c0 = arith.constant 0 : index
    %c0_1 = arith.constant 0 : index
    %c0_2 = arith.constant 0 : index
    %3 = vector.load %arg5[%c0, %c0_1, %c0_2] : memref<2x8x128xf32, #tpu.memory_space<vmem>>, vector<2x8x128xf32>
    %c0_3 = arith.constant 0 : index
    %c0_4 = arith.constant 0 : index
    %c0_5 = arith.constant 0 : index
    %4 = vector.load %arg6[%c0_3, %c0_4, %c0_5] : memref<2x8x128xf32, #tpu.memory_space<vmem>>, vector<2x8x128xf32>
    %cst = arith.constant dense<0.000000e+00> : vector<2x8x8xf32>
    %5 = tpu.matmul %3, %4, %cst {dimension_numbers = #tpu.dot_dimension_numbers<[2], [2], [1], [1], [0, 0, 0, 1, 1, 1], [0], [0]>} : vector<2x8x128xf32>, vector<2x8x128xf32>, vector<2x8x8xf32> -> vector<2x8x8xf32>
    %c0_6 = arith.constant 0 : index
    %c0_7 = arith.constant 0 : index
    %c0_8 = arith.constant 0 : index
    %6 = vector.load %arg4[%c0_6, %c0_7, %c0_8] : memref<2x1x8xi32, #tpu.memory_space<vmem>>, vector<2x1x8xi32>
    %c0_i32_9 = arith.constant 0 : i32
    %7 = vector.broadcast %c0_i32_9 : i32 to vector<2x1x8xi32>
    %8 = arith.cmpi ne, %6, %7 : vector<2x1x8xi32>
    %9 = tpu.iota {dimensions = array<i32: 0>} : vector<8x8xi32>
    %10 = tpu.iota {dimensions = array<i32: 1>} : vector<8x8xi32>
    %11 = arith.subi %9, %10 : vector<8x8xi32>
    %c8_i32 = arith.constant 8 : i32
    %12 = arith.muli %arg2, %c8_i32 : i32
    %c8_i32_10 = arith.constant 8 : i32
    %13 = arith.muli %arg1, %c8_i32_10 : i32
    %14 = arith.subi %12, %13 : i32
    %15 = vector.broadcast %14 : i32 to vector<8x8xi32>
    %16 = arith.cmpi eq, %11, %15 : vector<8x8xi32>
    %17 = vector.shape_cast %16 : vector<8x8xi1> to vector<1x8x8xi1>
    %18 = vector.broadcast %8 : vector<2x1x8xi1> to vector<2x8x8xi1>
    %19 = vector.broadcast %17 : vector<1x8x8xi1> to vector<2x8x8xi1>
    %20 = arith.ori %18, %19 : vector<2x8x8xi1>
    %cst_11 = arith.constant 0xFF800000 : f32
    %21 = vector.broadcast %cst_11 : f32 to vector<2x8x8xf32>
    %22 = arith.select %20, %21, %5 : vector<2x8x8xi1>, vector<2x8x8xf32>
    %c0_12 = arith.constant 0 : index
    %c0_13 = arith.constant 0 : index
    %c0_14 = arith.constant 0 : index
    %23 = vector.load %arg9[%c0_12, %c0_13, %c0_14] : memref<2x8x1xf32, #tpu.memory_space<vmem>>, vector<2x8x1xf32>
    %cst_15 = arith.constant dense<0xFF800000> : vector<2x8xf32>
    %24 = vector.multi_reduction <maximumf>, %22, %cst_15 [2] : vector<2x8x8xf32> to vector<2x8xf32>
    %25 = vector.shape_cast %24 : vector<2x8xf32> to vector<2x8x1xf32>
    %26 = arith.maximumf %23, %25 : vector<2x8x1xf32>
    %cst_16 = arith.constant 0xFF800000 : f32
    %27 = vector.broadcast %cst_16 : f32 to vector<2x8x1xf32>
    %28 = arith.cmpf oeq, %26, %27 : vector<2x8x1xf32>
    %cst_17 = arith.constant 0.000000e+00 : f32
    %29 = vector.broadcast %cst_17 : f32 to vector<2x8x1xf32>
    %30 = arith.select %28, %29, %26 : vector<2x8x1xi1>, vector<2x8x1xf32>
    %31 = arith.subf %23, %30 : vector<2x8x1xf32>
    %32 = math.exp %31 : vector<2x8x1xf32>
    %33 = vector.broadcast %30 : vector<2x8x1xf32> to vector<2x8x8xf32>
    %34 = arith.subf %22, %33 : vector<2x8x8xf32>
    %35 = math.exp %34 : vector<2x8x8xf32>
    %c0_18 = arith.constant 0 : index
    %c0_19 = arith.constant 0 : index
    %c0_20 = arith.constant 0 : index
    %36 = vector.load %arg10[%c0_18, %c0_19, %c0_20] : memref<2x8x1xf32, #tpu.memory_space<vmem>>, vector<2x8x1xf32>
    %37 = arith.mulf %32, %36 : vector<2x8x1xf32>
    %cst_21 = arith.constant dense<0.000000e+00> : vector<2x8xf32>
    %38 = vector.multi_reduction <add>, %35, %cst_21 [2] : vector<2x8x8xf32> to vector<2x8xf32>
    %39 = vector.shape_cast %38 : vector<2x8xf32> to vector<2x8x1xf32>
    %40 = arith.addf %37, %39 : vector<2x8x1xf32>
    %c0_22 = arith.constant 0 : index
    %c0_23 = arith.constant 0 : index
    %c0_24 = arith.constant 0 : index
    %41 = vector.load %arg10[%c0_22, %c0_23, %c0_24] : memref<2x8x1xf32, #tpu.memory_space<vmem>>, vector<2x8x1xf32>
    tpu.vector_store %arg10[%c0_22, %c0_23, %c0_24], %40 {strides = array<i32>} : memref<2x8x1xf32, #tpu.memory_space<vmem>>, vector<2x8x1xf32>,
    %c0_25 = arith.constant 0 : index
    %c0_26 = arith.constant 0 : index
    %c0_27 = arith.constant 0 : index
    %42 = vector.load %arg11[%c0_25, %c0_26, %c0_27] : memref<2x8x128xf32, #tpu.memory_space<vmem>>, vector<2x8x128xf32>
    %43 = vector.broadcast %32 : vector<2x8x1xf32> to vector<2x8x128xf32>
    %44 = arith.mulf %43, %42 : vector<2x8x128xf32>
    %c0_28 = arith.constant 0 : index
    %c0_29 = arith.constant 0 : index
    %c0_30 = arith.constant 0 : index
    %45 = vector.load %arg7[%c0_28, %c0_29, %c0_30] : memref<2x8x128xf32, #tpu.memory_space<vmem>>, vector<2x8x128xf32>
    %cst_31 = arith.constant dense<0.000000e+00> : vector<2x8x128xf32>
    %46 = tpu.matmul %35, %45, %cst_31 {dimension_numbers = #tpu.dot_dimension_numbers<[2], [1], [1], [2], [0, 0, 0, 1, 1, 2], [0], [0]>} : vector<2x8x8xf32>, vector<2x8x128xf32>, vector<2x8x128xf32> -> vector<2x8x128xf32>
    %47 = arith.addf %44, %46 : vector<2x8x128xf32>
    %c0_32 = arith.constant 0 : index
    %c0_33 = arith.constant 0 : index
    %c0_34 = arith.constant 0 : index
    %48 = vector.load %arg11[%c0_32, %c0_33, %c0_34] : memref<2x8x128xf32, #tpu.memory_space<vmem>>, vector<2x8x128xf32>
    tpu.vector_store %arg11[%c0_32, %c0_33, %c0_34], %47 {strides = array<i32>} : memref<2x8x128xf32, #tpu.memory_space<vmem>>, vector<2x8x128xf32>,
    %c0_35 = arith.constant 0 : index
    %c0_36 = arith.constant 0 : index
    %c0_37 = arith.constant 0 : index
    %49 = vector.load %arg9[%c0_35, %c0_36, %c0_37] : memref<2x8x1xf32, #tpu.memory_space<vmem>>, vector<2x8x1xf32>
    tpu.vector_store %arg9[%c0_35, %c0_36, %c0_37], %26 {strides = array<i32>} : memref<2x8x1xf32, #tpu.memory_space<vmem>>, vector<2x8x1xf32>,
    %c0_i32_38 = arith.constant 0 : i32
    %50 = arith.cmpi eq, %arg2, %c0_i32_38 : i32
    %51 = arith.extui %50 : i1 to i32
    %c0_i32_39 = arith.constant 0 : i32
    %52 = arith.cmpi ne, %51, %c0_i32_39 : i32
    scf.if %52 {
      %c0_40 = arith.constant 0 : index
      %c0_41 = arith.constant 0 : index
      %c0_42 = arith.constant 0 : index
      %53 = vector.load %arg10[%c0_40, %c0_41, %c0_42] : memref<2x8x1xf32, #tpu.memory_space<vmem>>, vector<2x8x1xf32>
      %cst_43 = arith.constant 0.000000e+00 : f32
      %54 = vector.broadcast %cst_43 : f32 to vector<2x8x1xf32>
      %55 = arith.cmpf oeq, %53, %54 : vector<2x8x1xf32>
      %56 = tpu.reciprocal %53 : vector<2x8x1xf32> -> vector<2x8x1xf32>
      %cst_44 = arith.constant 0.000000e+00 : f32
      %57 = vector.broadcast %cst_44 : f32 to vector<2x8x1xf32>
      %58 = arith.select %55, %57, %56 : vector<2x8x1xi1>, vector<2x8x1xf32>
      %c0_45 = arith.constant 0 : index
      %c0_46 = arith.constant 0 : index
      %c0_47 = arith.constant 0 : index
      %59 = vector.load %arg3[%c0_45, %c0_46, %c0_47] : memref<2x8x1xi32, #tpu.memory_space<vmem>>, vector<2x8x1xi32>
      %c0_i32_48 = arith.constant 0 : i32
      %60 = vector.broadcast %c0_i32_48 : i32 to vector<2x8x1xi32>
      %61 = arith.cmpi ne, %59, %60 : vector<2x8x1xi32>
      %cst_49 = arith.constant 0.000000e+00 : f32
      %62 = vector.broadcast %cst_49 : f32 to vector<2x8x1xf32>
      %63 = arith.cmpf oeq, %53, %62 : vector<2x8x1xf32>
      %64 = arith.ori %61, %63 : vector<2x8x1xi1>
      %c0_50 = arith.constant 0 : index
      %c0_51 = arith.constant 0 : index
      %c0_52 = arith.constant 0 : index
      %65 = vector.load %arg11[%c0_50, %c0_51, %c0_52] : memref<2x8x128xf32, #tpu.memory_space<vmem>>, vector<2x8x128xf32>
      %66 = vector.broadcast %58 : vector<2x8x1xf32> to vector<2x8x128xf32>
      %67 = arith.mulf %65, %66 : vector<2x8x128xf32>
      %cst_53 = arith.constant 0.000000e+00 : f32
      %68 = vector.shape_cast %64 : vector<2x8x1xi1> to vector<2x8x1xi1>
      %69 = vector.broadcast %68 : vector<2x8x1xi1> to vector<2x8x128xi1>
      %70 = vector.broadcast %cst_53 : f32 to vector<2x8x128xf32>
      %71 = arith.select %69, %70, %67 : vector<2x8x128xi1>, vector<2x8x128xf32>
      %c0_54 = arith.constant 0 : index
      %c0_55 = arith.constant 0 : index
      %c0_56 = arith.constant 0 : index
      %72 = vector.load %arg8[%c0_54, %c0_55, %c0_56] : memref<2x8x128xf32, #tpu.memory_space<vmem>>, vector<2x8x128xf32>
      tpu.vector_store %arg8[%c0_54, %c0_55, %c0_56], %71 {strides = array<i32>} : memref<2x8x128xf32, #tpu.memory_space<vmem>>, vector<2x8x128xf32>,
    } else {
    }
    return
  }
  func.func @transform_0(%arg0: i32, %arg1: i32, %arg2: i32) -> (i32, i32, i32) {
    %c0_i32 = arith.constant 0 : i32
    %c0_i32_0 = arith.constant 0 : i32
    return %arg0, %arg1, %c0_i32 : i32, i32, i32
  }
  func.func @transform_1(%arg0: i32, %arg1: i32, %arg2: i32) -> (i32, i32, i32) {
    %c0_i32 = arith.constant 0 : i32
    %c0_i32_0 = arith.constant 0 : i32
    return %arg0, %c0_i32, %arg2 : i32, i32, i32
  }
  func.func @transform_2(%arg0: i32, %arg1: i32, %arg2: i32) -> (i32, i32, i32) {
    %c0_i32 = arith.constant 0 : i32
    %c0_i32_0 = arith.constant 0 : i32
    return %arg0, %arg1, %c0_i32 : i32, i32, i32
  }
  func.func @transform_3(%arg0: i32, %arg1: i32, %arg2: i32) -> (i32, i32, i32) {
    %c0_i32 = arith.constant 0 : i32
    %c0_i32_0 = arith.constant 0 : i32
    return %arg0, %arg2, %c0_i32 : i32, i32, i32
  }
  func.func @transform_4(%arg0: i32, %arg1: i32, %arg2: i32) -> (i32, i32, i32) {
    %c0_i32 = arith.constant 0 : i32
    %c0_i32_0 = arith.constant 0 : i32
    return %arg0, %arg2, %c0_i32 : i32, i32, i32
  }
  func.func @transform_5(%arg0: i32, %arg1: i32, %arg2: i32) -> (i32, i32, i32) {
    %c0_i32 = arith.constant 0 : i32
    %c0_i32_0 = arith.constant 0 : i32
    return %arg0, %arg1, %c0_i32 : i32, i32, i32
  }
}

</mosaic_0001>

<bundles_post_ra>
// kernel: tpu_custom_call.1
= control target key start
LH: loop header
LB: loop body
LE: loop exit
PB: predicated region body
PF: predicated region fallthrough
CT: control target
= control target key end

     0   :  { %10 = vsyncpa [#allocation6], 0  ;;  %s767_s0 = inlined_call_operand.vmem [shape: s32[2,8,1], index: 0, kind: input, shape index: {}]   ;;  %s768_s1 = inlined_call_operand.hbm [shape: s32[2,1,8], index: 1, kind: input, shape index: {}]   ;;  %s769_s2 = inlined_call_operand.vmem [shape: f32[2,8,128], index: 2, kind: input, shape index: {}]   ;;  %s770_s3 = inlined_call_operand.hbm [shape: f32[2,8,128], index: 3, kind: input, shape index: {}]   ;;  %s771_s4 = inlined_call_operand.vmem [shape: f32[2,8,128], index: 4, kind: input, shape index: {}]   ;;  %s772_s5 = inlined_call_operand.hbm [shape: f32[2,8,128], index: 5, kind: output, shape index: {}]  }
   0x1   :  { %11 = vsyncpa [#allocation9], 0 }
   0x2   :  { %12 = vsyncpa [#allocation7], 0  ;;  %s646_s18 = smov [#allocation5]   ;;  %s574_s22 = scalar_lea.hbm %s768_s1, 32 }
   0x3   :  { %s20_s19 = sshll.u32 %s646_s18, 4  ;;  %p575_p0 = scmp.ne.s32.totalorder %s768_s1, %s574_s22  ;;  %s21_s19 = int_to_ptr.vmem [resolvable:$true] %s20_s19 }
   0x4   :  { %p578_p1 = scmp.lt.u32.totalorder %s574_s22, %s768_s1 }
   0x6   :  { %p580_p2 = pnand %p578_p1, %p575_p0 }
   0x8   :  { %583 = shalt.err (!%p580_p2)
}
   0x9   :  { %s584_s27 = scalar_lea.vmem %s21_s19, 32  ;;  %p589_p4 = scmp.lt.s32.totalorder %s21_s19, %s21_s19 }
   0xa   :  { %p585_p3 = scmp.ne.s32.totalorder %s21_s19, %s584_s27  ;;  %p590_p5 = scmp.lt.s32.totalorder %s584_s27, %s584_s27 }
   0xc   :  { %p591_p6 = por %p590_p5, %p589_p4 }
   0xe   :  { %p592_p7 = pnand %p591_p6, %p585_p3 }
  0x10   :  { %595 = shalt.err (!%p592_p7)
}
  0x11   :  { %s647_s28 = smov 16   ;;  %s648_s29 = smov 1  }
  0x12   :  { %26 = dma.hbm_to_vmem [thread:$0]  %s768_s1, 32, %s21_s19, [#allocation6], %s647_s28, %s647_s28, %s648_s29  }
  0x13   :  { %s649_s7 = smov [#allocation8]   ;;  %s596_s11 = scalar_lea.hbm %s770_s3, 256 }
  0x14   :  { %s34_s8 = sshll.u32 %s649_s7, 4  ;;  %p597_p8 = scmp.ne.s32.totalorder %s770_s3, %s596_s11  ;;  %s35_s8 = int_to_ptr.vmem [resolvable:$true] %s34_s8 }
  0x15   :  { %p600_p9 = scmp.lt.u32.totalorder %s596_s11, %s770_s3 }
  0x17   :  { %p602_p10 = pnand %p600_p9, %p597_p8 }
  0x19   :  { %605 = shalt.err (!%p602_p10)
}
  0x1a   :  { %s606_s16 = scalar_lea.vmem %s35_s8, 256  ;;  %p611_p12 = scmp.lt.s32.totalorder %s35_s8, %s35_s8 }
  0x1b   :  { %p607_p11 = scmp.ne.s32.totalorder %s35_s8, %s606_s16  ;;  %p612_p13 = scmp.lt.s32.totalorder %s606_s16, %s606_s16 }
  0x1d   :  { %p613_p0 = por %p612_p13, %p611_p12 }
  0x1f   :  { %p614_p1 = pnand %p613_p0, %p607_p11 }
  0x21   :  { %617 = shalt.err (!%p614_p1)
}
  0x22   :  { %s650_s1 = smov 128   ;;  %s651_s17 = smov 8  }
  0x23   :  { %40 = dma.hbm_to_vmem [thread:$0]  %s770_s3, 256, %s35_s8, [#allocation9], %s650_s1, %s650_s1, %s651_s17  }
  0x24   :  { %640 = dma.done.wait [#allocation6], 32  }
  0x25   :  { %641 = vsyncadd [#allocation6], 4294967264 }
  0x26   :  { %642 = dma.done.wait [#allocation9], 256  }
  0x27   :  { %643 = vsyncadd [#allocation9], 4294967040  ;;  %v652_v0 = vmov 0.0   ;;  %vm653_vm0 = vmmov 0   ;;  %v62_v1 = vld [vmem:[#allocation8] sm:$0xff]  ;;  %v63_v2 = vld [vmem:[#allocation8 + $0x8] sm:$0xff]  ;;  %v208_v7 = vlaneseq }
  0x28   :  { %529 = vmatprep.subr.mxu0 %v652_v0  ;;  %531 = vmatprep.mubr.msk.f32.mxu0 %vm653_vm0, %v652_v0  ;;  %v60_v3 = vld [vmem:[%s769_s2] sm:$0xff]  ;;  %v61_v4 = vld [vmem:[%s769_s2 + $0x8] sm:$0xff]  ;;  %v654_v5 = vmov 0   ;;  %vm53_vm1 = vcmask 7168   ;;  %v655_v6 = vmov -inf   ;;  %vm238_vm9 = vcmask 64512  }
  0x29   :  { %534 = vmatprep.subr.mxu1 %v652_v0  ;;  %536 = vmatprep.mubr.msk.f32.mxu1 %vm653_vm0, %v652_v0  ;;  %54 = vst.msk [vmem:[#allocation2] sm:$0xff] %vm53_vm1, %v655_v6  ;;  %55 = vst.msk [vmem:[#allocation2 + $0x8] sm:$0xff] %vm53_vm1, %v655_v6  ;;  %v204_v8 = vld [vmem:[#allocation5] sm:$0x1]  ;;  %v209_v9 = vshrl.u32 %v208_v7, 7  ;;  %v211_v11 = vand.u32 127, %v208_v7 }
  0x2a   :  { %530 = vmatpush3.xpose.msra.mxu0 %v62_v1  ;;  %535 = vmatpush3.xpose.msra.mxu1 %v63_v2  ;;  %56 = vst.msk [vmem:[#allocation3] sm:$0xff] %vm53_vm1, %v652_v0  ;;  %57 = vst.msk [vmem:[#allocation3 + $0x8] sm:$0xff] %vm53_vm1, %v652_v0  ;;  %v205_v10 = vld [vmem:[#allocation5 + $0x1] sm:$0x1]  ;;  %vm206_vm2 = vcmp.ne.s32.totalorder %v204_v8, 0  ;;  %v303_v37 = vld [vmem:[%s771_s4 + $0x8] sm:$0xff] }
  0x2b   :  { %539 = vmatprep.subr.mxu0 %v652_v0  ;;  %544 = vmatprep.subr.mxu1 %v652_v0  ;;  %vm207_vm3 = vcmp.ne.s32.totalorder %v205_v10, 0  ;;  %v222_v12 = vsub.s32 0, %v209_v9  ;;  %v218_v13 = vsel %vm206_vm2, 1, %v654_v5  ;;  %v212_v15 = vsub.s32 %v209_v9, %v211_v11  ;;  %v302_v36 = vld [vmem:[%s771_s4] sm:$0xff]  ;;  %v468_v1 = vld [vmem:[%s767_s0 + $0x8] sm:$0xff] }
  0x2c   :  { %560 = vset.pattern.permute.xlu1 %v654_v5  ;;  %561 = vset.pattern.permute.xlu0 %v654_v5  ;;  %v219_v14 = vsel %vm207_vm3, 1, %v654_v5  ;;  %v467_v60 = vld [vmem:[%s767_s0] sm:$0xff]  ;;  %s656_s0 = smov [#allocation10]  }
  0x2d   :  { %532 = vmatmul.mubr.f32.vlgmr.msra.gmra.mrb[0].mxu0 %v60_v3  ;;  %537 = vmatmul.mubr.f32.vlgmr.msra.gmra.mrb[0].mxu1 %v61_v4  ;;  %v223_v16 = vrot.slane %v218_v13, %v222_v12  ;;  %v227_v17 = vrot.slane %v219_v14, %v222_v12  ;;  %vm217_vm4 = vcmp.eq.s32.totalorder %v212_v15, 0  ;;  %vm469_vm12 = vcmp.ne.s32.totalorder %v467_v60, 0  ;;  %s506_s29 = sshll.u32 %s656_s0, 4  ;;  %s507_s29 = int_to_ptr.vmem [resolvable:$true] %s506_s29 }
  0x2e   :  { %541 = vmatprep.mubr.msk.f32.mxu0 %vm653_vm0, %v652_v0  ;;  %546 = vmatprep.mubr.msk.f32.mxu1 %vm653_vm0, %v652_v0  ;;  %vm470_vm0 = vcmp.ne.s32.totalorder %v468_v1, 0  ;;  %s618_s30 = scalar_lea.vmem %s507_s29, 256  ;;  %p623_p3 = scmp.lt.s32.totalorder %s507_s29, %s507_s29 }
  0x2f   :  { %vm228_vm5 = vcmp.eq.s32.totalorder %v223_v16, 1  ;;  %vm229_vm6 = vcmp.eq.s32.totalorder %v227_v17, 1  ;;  %540 = vmatpush3.msra.mxu0 %v302_v36  ;;  %545 = vmatpush3.msra.mxu1 %v303_v37  ;;  %p619_p2 = scmp.ne.s32.totalorder %s507_s29, %s618_s30  ;;  %p624_p4 = scmp.lt.s32.totalorder %s618_s30, %s618_s30 }
  0x30   :  { %vm232_vm7 = vmor %vm228_vm5, %vm217_vm4  ;;  %v236_v26 = vld [vmem:[#allocation2] sm:$0xff]  ;;  %v237_v29 = vld [vmem:[#allocation2 + $0x8] sm:$0xff] }
  0x31   :  { %vm233_vm8 = vmor %vm229_vm6, %vm217_vm4  ;;  %v273_v52 = vld [vmem:[#allocation3] sm:$0xff]  ;;  %v274_v55 = vld [vmem:[#allocation3 + $0x8] sm:$0xff]  ;;  %p625_p5 = por %p624_p4, %p623_p3 }
  0x33   :  { %p626_p6 = pnand %p625_p5, %p619_p2 }
 0x100   :  { %v130_v18 = vpop.f32.mrb[0].mxu0  ;;  %v200_v19 = vpop.f32.mrb[0].mxu1 }
 0x101   :  { %v234_v20 = vsel %vm232_vm7, -inf, %v130_v18  ;;  %v533_v21 = vpop.f32.mrb[1].mxu0  ;;  %v235_v22 = vsel %vm233_vm8, -inf, %v200_v19  ;;  %v538_v23 = vpop.f32.mrb[1].mxu1 }
 0x102   :  { %v239_v24 = vsel %vm238_vm9, %v234_v20, -inf  ;;  %v242_v25 = vsel %vm238_vm9, %v235_v22, -inf }
 0x103   :  { %240 = vmax.xlane.f32.xlu0 %v239_v24 }
 0x107   :  { %243 = vmax.xlane.f32.xlu0 %v242_v25 }
 0x190   :  { %v241_v27 = vpop.xlane.xlu0 %240 }
 0x191   :  { %v245_v28 = vmax.f32 %v236_v26, %v241_v27 }
 0x193   :  { %454 = vst.msk [vmem:[#allocation2] sm:$0xff] %vm53_vm1, %v245_v28  ;;  %vm247_vm10 = vcmp.eq.f32.partialorder %v245_v28, -inf }
 0x194   :  { %v244_v30 = vpop.xlane.xlu0 %243  ;;  %v249_v31 = vsel %vm247_vm10, 0.0, %v245_v28 }
 0x195   :  { %v246_v32 = vmax.f32 %v237_v29, %v244_v30  ;;  %259 = vperm.xlu1 %560, %v249_v31   ;;  %v251_v33 = vsub.f32 %v236_v26, %v249_v31 }
 0x197   :  { %455 = vst.msk [vmem:[#allocation2 + $0x8] sm:$0xff] %vm53_vm1, %v246_v32  ;;  %vm248_vm11 = vcmp.eq.f32.partialorder %v246_v32, -inf  ;;  %v253_v49 = vmul.f32 1.442695, %v251_v33 }
 0x198   :  { %v250_v34 = vsel %vm248_vm11, 0.0, %v246_v32 }
 0x199   :  { %v252_v35 = vsub.f32 %v237_v29, %v250_v34  ;;  %264 = vperm.xlu1 %560, %v250_v34  }
 0x19b   :  { %v255_v48 = vmul.f32 1.442695, %v252_v35 }
 0x214   :  { %v260_v38 = vpop.permute.xlu1 %259 }
 0x215   :  { %v267_v39 = vsub.f32 %v234_v20, %v260_v38 }
 0x217   :  { %v269_v40 = vmul.f32 1.442695, %v267_v39 }
 0x218   :  { %v265_v41 = vpop.permute.xlu1 %264 }
 0x219   :  { %562 = vpow2.f32 %v269_v40  ;;  %v268_v42 = vsub.f32 %v235_v22, %v265_v41 }
 0x21b   :  { %v271_v43 = vmul.f32 1.442695, %v268_v42 }
 0x21d   :  { %564 = vpow2.f32 %v271_v43 }
 0x21e   :  { %566 = vpow2.f32 %v255_v48 }
 0x21f   :  { %568 = vpow2.f32 %v253_v49 }
 0x223   :  { %v563_v44 = vpop.eup %562 }
 0x224   :  { %542 = vmatmul.mubr.msk.f32.vlgmr.msra.gmra.mrb[2].mxu0 %vm238_vm9, %v563_v44  ;;  %v277_v45 = vsel %vm238_vm9, %v563_v44, 0.0 }
 0x225   :  { %278 = vadd.xlane.f32.xlu0 %v277_v45 }
 0x227   :  { %v565_v46 = vpop.eup %564 }
 0x228   :  { %547 = vmatmul.mubr.msk.f32.vlgmr.msra.gmra.mrb[2].mxu1 %vm238_vm9, %v565_v46  ;;  %v280_v47 = vsel %vm238_vm9, %v565_v46, 0.0  ;;  %v567_v50 = vpop.eup %566 }
 0x229   :  { %281 = vadd.xlane.f32.xlu1 %v280_v47  ;;  %v569_v51 = vpop.eup %568  ;;  %v276_v57 = vmul.f32 %v567_v50, %v274_v55 }
 0x22a   :  { %v275_v53 = vmul.f32 %v569_v51, %v273_v52 }
 0x23a   :  { %297 = vperm.xlu1 %560, %v567_v50  }
 0x23b   :  { %292 = vperm.xlu0 %561, %v569_v51  }
 0x2b2   :  { %v279_v54 = vpop.xlane.xlu0 %278 }
 0x2b3   :  { %v283_v56 = vadd.f32 %v279_v54, %v275_v53 }
 0x2b5   :  { %286 = vst.msk [vmem:[#allocation3] sm:$0xff] %vm53_vm1, %v283_v56 }
 0x2b6   :  { %v282_v58 = vpop.xlane.xlu1 %281 }
 0x2b7   :  { %v284_v59 = vadd.f32 %v282_v58, %v276_v57 }
 0x2b9   :  { %287 = vst.msk [vmem:[#allocation3 + $0x8] sm:$0xff] %vm53_vm1, %v284_v59 }
 0x2ba   :  { %v293_v11 = vpop.permute.xlu0 %292  ;;  %v298_v12 = vpop.permute.xlu1 %297 }
 0x2bb   :  { %v300_v13 = vmul.f32 0.0, %v293_v11  ;;  %v301_v19 = vmul.f32 0.0, %v298_v12 }
 0x2bc   :  { %v459_v61 = vld [vmem:[#allocation3] sm:$0xff] }
 0x2bd   :  { %vm461_vm13 = vcmp.eq.f32.partialorder %v459_v61, 0.0  ;;  %570 = vrcp.f32 %v459_v61 }
 0x2be   :  { %vm471_vm14 = vmor %vm469_vm12, %vm461_vm13 }
 0x2bf   :  { %v487_v62 = vsel %vm471_vm14, 1, %v654_v5 }
 0x2c0   :  { %490 = vperm.xlu1 %560, %v487_v62   ;;  %v460_v63 = vld [vmem:[#allocation3 + $0x8] sm:$0xff] }
 0x2c1   :  { %572 = vrcp.f32 %v460_v63  ;;  %vm462_vm15 = vcmp.eq.f32.partialorder %v460_v63, 0.0 }
 0x2c2   :  { %vm472_vm1 = vmor %vm470_vm0, %vm462_vm15 }
 0x2c3   :  { %v488_v6 = vsel %vm472_vm1, 1, %v654_v5 }
 0x2c7   :  { %v571_v0 = vpop.eup %570 }
 0x2c8   :  { %v465_v2 = vsel %vm461_vm13, 0.0, %v571_v0 }
 0x2c9   :  { %477 = vperm.xlu0 %561, %v465_v2  }
 0x2cb   :  { %v573_v3 = vpop.eup %572 }
 0x2cc   :  { %v466_v4 = vsel %vm462_vm15, 0.0, %v573_v3 }
 0x2cd   :  { %482 = vperm.xlu0 %561, %v466_v4  }
 0x2d1   :  { %493 = vperm.xlu0 %561, %v488_v6  }
 0x2f7   :  { %v373_v7 = vpop.f32.mrb[2].mxu0 }
 0x2f8   :  { %v543_v8 = vpop.f32.mrb[3].mxu0  ;;  %v450_v14 = vadd.f32 %v373_v7, %v300_v13 }
 0x2fb   :  { %v446_v9 = vpop.f32.mrb[2].mxu1 }
 0x2fc   :  { %v548_v10 = vpop.f32.mrb[3].mxu1  ;;  %v451_v21 = vadd.f32 %v446_v9, %v301_v19 }
 0x33f   :  { %v491_v15 = vpop.permute.xlu1 %490 }
 0x340   :  { %vm495_vm2 = vcmp.eq.s32.totalorder %v491_v15, 1 }
 0x348   :  { %v478_v16 = vpop.permute.xlu0 %477 }
 0x349   :  { %v485_v17 = vmul.f32 %v478_v16, %v450_v14 }
 0x34b   :  { %v497_v18 = vsel %vm495_vm2, 0.0, %v485_v17 }
 0x34c   :  { %499 = vst [vmem:[#allocation10] sm:$0xff] %v497_v18  ;;  %v483_v20 = vpop.permute.xlu0 %482 }
 0x34d   :  { %v486_v5 = vmul.f32 %v483_v20, %v451_v21 }
 0x350   :  { %v494_v22 = vpop.permute.xlu0 %493 }
 0x351   :  { %vm496_vm3 = vcmp.eq.s32.totalorder %v494_v22, 1 }
 0x352   :  { %v498_v23 = vsel %vm496_vm3, 0.0, %v486_v5 }
 0x353   :  { %500 = vst [vmem:[#allocation10 + $0x8] sm:$0xff] %v498_v23 }
 0x354   :  { %629 = shalt.err (!%p626_p6)
}
 0x355   :  { %s630_s8 = scalar_lea.hbm %s772_s5, 256 }
 0x356   :  { %p631_p7 = scmp.ne.s32.totalorder %s772_s5, %s630_s8  ;;  %p634_p8 = scmp.lt.u32.totalorder %s630_s8, %s772_s5 }
 0x358   :  { %p636_p9 = pnand %p634_p8, %p631_p7 }
 0x35a   :  { %639 = shalt.err (!%p636_p9)
}
 0x35b   :  { %512 = dma.vmem_to_hbm [thread:$0]  %s507_s29, 256, %s772_s5, [#allocation7], %s650_s1, %s650_s1, %s651_s17  }
 0x35c   :  { %644 = dma.done.wait [#allocation7], 256  }
 0x35d   :  { %645 = vsyncadd [#allocation7], 4294967040 }
 0x35e   :  { %516 = vsyncpa [#allocation6], 1 }
 0x35f   :  { %517 = vsyncpa [#allocation9], 1 }
 0x360   :  { %518 = vsyncpa [#allocation7], 1 }

</bundles_post_ra>
